<compile_context>
chip_gen: v7x
topology: tpu7x:2x2x1
jax: 0.10.0
libtpu: 0.0.40
codegen_flags: <defaults>
</compile_context>

<pallas_src>
import math

import jax
import jax.numpy as jnp
from jax import lax
from jax.experimental import pallas as pl
from jax.experimental.pallas import tpu as pltpu


def mlp_kernel(x_ref, w1T_ref, b1_ref, w2_ref, b2_ref, o_ref):
    # x: (TB, 10)  w1T: (5, 10)  b1: (5, 1)  w2: (5, 1)  b2: (1, 1)  o: (1, TB)
    # fc1 on the MXU: contract the 10-wide feature dim of BOTH operands so the
    # result (5, TB) is lane-dense (batch on lanes) without a wrapper transpose.
    h = lax.dot_general(
        w1T_ref[...], x_ref[...],
        dimension_numbers=(((1,), (1,)), ((), ())),
        preferred_element_type=jnp.float32,
    )                                                           # (5, TB)
    # Bias (lane-broadcast of a (5,1) column) + ReLU on the VPU.
    h = jnp.maximum(h + b1_ref[...], 0.0)                       # (5, TB)
    # fc2 (out_features == 1): scale each hidden row by w2, reduce over 5 rows.
    y = jnp.sum(h * w2_ref[...], axis=0, keepdims=True)         # (1, TB)
    o_ref[...] = (y + b2_ref[...]).astype(o_ref.dtype)


TB_MAX = 16 * 1024   # rows of x per grid step (~650 KB HBM traffic / step)


def _choose_tiling(B):
    """Pick (TB, grid_steps).

    Goals: TB <= B (no block larger than the array), TB sublane/lane legal,
    per-step DMA large enough to hide the ~0.35 us step overhead, >= 2 steps
    when B allows (v7x megacore), and last-block over-coverage kept small
    instead of padding B up to a multiple of a huge TB.
    """
    if B < 8:
        return B, 1
    if B < 256:
        tb = (B // 8) * 8                        # largest multiple of 8 <= B
        return tb, pl.cdiv(B, tb)                # at most one small ragged block
    n_units = pl.cdiv(B, 128)                    # 128-row units needed to cover B
    steps = max(pl.cdiv(B, TB_MAX), 2)           # >= 2 so both v7x cores get work
    steps = min(steps, B // 128)                 # keep TB >= 128 and TB <= B
    tb = min(pl.cdiv(n_units, steps) * 128, (B // 128) * 128)
    return tb, pl.cdiv(B, tb)


def net_forward(x, w1, b1, w2, b2):
    """Fused fc1 -> relu -> fc2.

    x:  (B, 10) float32 (natural PyTorch layout)
    w1: (10, 5), b1: (5,), w2: (5, 1), b2: (1,)
    returns (B, 1) float32
    """
    B, K = x.shape                    # K = 10
    H = w1.shape[1]                   # H = 5
    N = w2.shape[1]                   # N = 1
    if N != 1:
        raise NotImplementedError("fc2 epilogue is specialized to out_features == 1")

    TB, steps = _choose_tiling(B)
    B_cov = TB * steps                # columns actually produced (>= B)

    # Tiny parameter reshapes (a few hundred bytes) -- not an HBM pass over x.
    w1T = w1.T                        # (5, 10)
    b1c = b1.reshape(H, 1)            # (5, 1)
    w2c = w2.reshape(H, N)            # (5, 1)
    b2c = b2.reshape(1, N)            # (1, 1)

    cost = pl.CostEstimate(
        flops=2 * B_cov * (K * H + H * N),
        transcendentals=0,
        bytes_accessed=(B_cov * (K + N) + K * H + H + H * N + N) * 4,
    )

    out = pl.pallas_call(
        mlp_kernel,
        out_shape=jax.ShapeDtypeStruct((1, B_cov), jnp.float32),
        grid=(steps,),
        in_specs=[
            pl.BlockSpec((TB, K), lambda i: (i, 0)),   # x marches over batch rows
            pl.BlockSpec((H, K), lambda i: (0, 0)),    # weights stay VMEM-resident
            pl.BlockSpec((H, 1), lambda i: (0, 0)),
            pl.BlockSpec((H, 1), lambda i: (0, 0)),
            pl.BlockSpec((1, 1), lambda i: (0, 0)),
        ],
        out_specs=pl.BlockSpec((1, TB), lambda i: (0, i)),
        compiler_params=pltpu.CompilerParams(
            dimension_semantics=("parallel",),
        ),
        cost_estimate=cost,
    )(x, w1T, b1c, w2c, b2c)

    # Columns >= B (ragged tail of the last block) are garbage computed from
    # clamped/unspecified out-of-bounds reads of x -- strip them here.
    return out[0, :B].reshape(B, 1)


def init_params(key):
    """Deterministic init mirroring nn.Linear's U(-1/sqrt(fan_in), 1/sqrt(fan_in))."""
    k1, k2, k3, k4 = jax.random.split(key, 4)
    bound1 = 1.0 / math.sqrt(10.0)
    bound2 = 1.0 / math.sqrt(5.0)
    w1 = jax.random.uniform(k1, (10, 5), jnp.float32, -bound1, bound1)
    b1 = jax.random.uniform(k2, (5,), jnp.float32, -bound1, bound1)
    w2 = jax.random.uniform(k3, (5, 1), jnp.float32, -bound2, bound2)
    b2 = jax.random.uniform(k4, (1,), jnp.float32, -bound2, bound2)
    return w1, b1, w2, b2


def _reference(x, w1, b1, w2, b2):
    return jnp.maximum(x @ w1 + b1[None, :], 0.0) @ w2 + b2[None, :]


if __name__ == "__main__":
    key = jax.random.PRNGKey(0)
    kx, kp, kx2 = jax.random.split(key, 3)
    w1, b1, w2, b2 = init_params(kp)

    # Main check: batch = 256 -> 2 grid steps of TB=128 (exercises the
    # multi-step / megacore-friendly path with exact coverage).
    batch = 256
    x = jax.random.normal(kx, (batch, 10), jnp.float32)
    out = net_forward(x, w1, b1, w2, b2)
    out = jax.block_until_ready(out)
    ref = _reference(x, w1, b1, w2, b2)
    assert out.shape == (batch, 1)
    assert jnp.allclose(out, ref, atol=1e-5, rtol=1e-5)

    # Ragged-tail check: batch = 300 -> 2 steps of TB=256, last block partial
    # (clamped DMA on the tail instead of padding B up to a TB multiple).
    batch2 = 300
    x2 = jax.random.normal(kx2, (batch2, 10), jnp.float32)
    out2 = net_forward(x2, w1, b1, w2, b2)
    out2 = jax.block_until_ready(out2)
    ref2 = _reference(x2, w1, b1, w2, b2)
    assert out2.shape == (batch2, 1)
    assert jnp.allclose(out2, ref2, atol=1e-5, rtol=1e-5)

    print("KERNEL_OK")
</pallas_src>

<mosaic_0001>
module attributes {stable_mosaic.version = 11 : i64} {
  func.func @mlp_kernel(%arg0: i32, %arg1: memref<128x10xf32, #tpu.memory_space<vmem>>, %arg2: memref<5x10xf32, #tpu.memory_space<vmem>>, %arg3: memref<5x1xf32, #tpu.memory_space<vmem>>, %arg4: memref<5x1xf32, #tpu.memory_space<vmem>>, %arg5: memref<1x1xf32, #tpu.memory_space<vmem>>, %arg6: memref<1x128xf32, #tpu.memory_space<vmem>>) attributes {dimension_semantics = [#tpu.dimension_semantics<parallel>], iteration_bounds = array<i64: 2>, scalar_prefetch = 0 : i64, scratch_operands = 0 : i64, tpu.core_type = #tpu.core_type<tc>, window_params = [{transform_indices = @transform_0, window_bounds = array<i64: 128, 10>}, {pipeline_mode = #tpu.pipeline_mode<synchronous>, transform_indices = @transform_1, window_bounds = array<i64: 5, 10>}, {pipeline_mode = #tpu.pipeline_mode<synchronous>, transform_indices = @transform_2, window_bounds = array<i64: 5, 1>}, {pipeline_mode = #tpu.pipeline_mode<synchronous>, transform_indices = @transform_3, window_bounds = array<i64: 5, 1>}, {pipeline_mode = #tpu.pipeline_mode<synchronous>, transform_indices = @transform_4, window_bounds = array<i64: 1, 1>}, {transform_indices = @transform_5, window_bounds = array<i64: 1, 128>}]} {
    %c0 = arith.constant 0 : index
    %c0_0 = arith.constant 0 : index
    %0 = vector.load %arg2[%c0, %c0_0] : memref<5x10xf32, #tpu.memory_space<vmem>>, vector<5x10xf32>
    %c0_1 = arith.constant 0 : index
    %c0_2 = arith.constant 0 : index
    %1 = vector.load %arg1[%c0_1, %c0_2] : memref<128x10xf32, #tpu.memory_space<vmem>>, vector<128x10xf32>
    %cst = arith.constant dense<0.000000e+00> : vector<5x128xf32>
    %2 = tpu.matmul %0, %1, %cst {dimension_numbers = #tpu.dot_dimension_numbers<[1], [1], [0], [0], [0, 0, 1, 0], [], []>} : vector<5x10xf32>, vector<128x10xf32>, vector<5x128xf32> -> vector<5x128xf32>
    %c0_3 = arith.constant 0 : index
    %c0_4 = arith.constant 0 : index
    %3 = vector.load %arg3[%c0_3, %c0_4] : memref<5x1xf32, #tpu.memory_space<vmem>>, vector<5x1xf32>
    %4 = vector.broadcast %3 : vector<5x1xf32> to vector<5x128xf32>
    %5 = arith.addf %2, %4 : vector<5x128xf32>
    %cst_5 = arith.constant 0.000000e+00 : f32
    %6 = vector.broadcast %cst_5 : f32 to vector<5x128xf32>
    %7 = arith.maximumf %5, %6 : vector<5x128xf32>
    %c0_6 = arith.constant 0 : index
    %c0_7 = arith.constant 0 : index
    %8 = vector.load %arg4[%c0_6, %c0_7] : memref<5x1xf32, #tpu.memory_space<vmem>>, vector<5x1xf32>
    %9 = vector.broadcast %8 : vector<5x1xf32> to vector<5x128xf32>
    %10 = arith.mulf %7, %9 : vector<5x128xf32>
    %cst_8 = arith.constant dense<0.000000e+00> : vector<128xf32>
    %11 = vector.multi_reduction <add>, %10, %cst_8 [0] : vector<5x128xf32> to vector<128xf32>
    %12 = vector.shape_cast %11 : vector<128xf32> to vector<1x128xf32>
    %c0_9 = arith.constant 0 : index
    %c0_10 = arith.constant 0 : index
    %13 = vector.load %arg5[%c0_9, %c0_10] : memref<1x1xf32, #tpu.memory_space<vmem>>, vector<1x1xf32>
    %14 = vector.broadcast %13 : vector<1x1xf32> to vector<1x128xf32>
    %15 = arith.addf %12, %14 : vector<1x128xf32>
    %c0_11 = arith.constant 0 : index
    %c0_12 = arith.constant 0 : index
    %16 = vector.load %arg6[%c0_11, %c0_12] : memref<1x128xf32, #tpu.memory_space<vmem>>, vector<1x128xf32>
    tpu.vector_store %arg6[%c0_11, %c0_12], %15 {strides = array<i32>} : memref<1x128xf32, #tpu.memory_space<vmem>>, vector<1x128xf32>,
    return
  }
  func.func @transform_0(%arg0: i32) -> (i32, i32) {
    %c0_i32 = arith.constant 0 : i32
    %c0_i32_0 = arith.constant 0 : i32
    return %arg0, %c0_i32 : i32, i32
  }
  func.func @transform_1(%arg0: i32) -> (i32, i32) {
    %c0_i32 = arith.constant 0 : i32
    %c0_i32_0 = arith.constant 0 : i32
    %c0_i32_1 = arith.constant 0 : i32
    return %c0_i32, %c0_i32_0 : i32, i32
  }
  func.func @transform_2(%arg0: i32) -> (i32, i32) {
    %c0_i32 = arith.constant 0 : i32
    %c0_i32_0 = arith.constant 0 : i32
    %c0_i32_1 = arith.constant 0 : i32
    return %c0_i32, %c0_i32_0 : i32, i32
  }
  func.func @transform_3(%arg0: i32) -> (i32, i32) {
    %c0_i32 = arith.constant 0 : i32
    %c0_i32_0 = arith.constant 0 : i32
    %c0_i32_1 = arith.constant 0 : i32
    return %c0_i32, %c0_i32_0 : i32, i32
  }
  func.func @transform_4(%arg0: i32) -> (i32, i32) {
    %c0_i32 = arith.constant 0 : i32
    %c0_i32_0 = arith.constant 0 : i32
    %c0_i32_1 = arith.constant 0 : i32
    return %c0_i32, %c0_i32_0 : i32, i32
  }
  func.func @transform_5(%arg0: i32) -> (i32, i32) {
    %c0_i32 = arith.constant 0 : i32
    %c0_i32_0 = arith.constant 0 : i32
    return %c0_i32, %arg0 : i32, i32
  }
}

</mosaic_0001>

<bundles_post_ra>
// kernel: tpu_custom_call.1
= control target key start
LH: loop header
LB: loop body
LE: loop exit
PB: predicated region body
PF: predicated region fallthrough
CT: control target
= control target key end

     0   :  { %s873_s0 = inlined_call_operand.vmem [shape: f32[256,10], index: 0, kind: input, shape index: {}]   ;;  %s874_s1 = inlined_call_operand.vmem [shape: f32[5,10], index: 1, kind: input, shape index: {}]   ;;  %s875_s2 = inlined_call_operand.vmem [shape: f32[5,1], index: 2, kind: input, shape index: {}]   ;;  %s876_s3 = inlined_call_operand.vmem [shape: f32[5,1], index: 3, kind: input, shape index: {}]   ;;  %s877_s4 = inlined_call_operand.<no memory space> [shape: f32[1,1], index: 4, kind: input, shape index: {}]   ;;  %s878_s5 = inlined_call_operand.hbm [shape: f32[1,256], index: 5, kind: output, shape index: {}]  }
   0x1   :  { %v10_v0 = vstv %s877_s4 }
   0x2   :  { %11 = vst [vmem:[#allocation2] sm:$0x1] %v10_v0 }
   0x3   :  { %12 = vsyncpa [#allocation4], 0 }
   0x4   :  { %14 = vsyncpa [#allocation4 + $0x1], 0  ;;  %s724_s20 = smov 0   ;;  %s726_s21 = smov 0  }
   0x5   :  { %s728_s22 = smov 0   ;;  %s730_s23 = smov 0  }
   0x6 LB: > { %s466_s4 = sadd.s32 4294967295, %s684_s23   ;;  %s467_s24 = sadd.s32 4294967294, %s684_s23   ;;  %s684_s23 = sphi %s730_s23, %s886_s23   ;;  %s680_s22 = sphi %s728_s22, %s885_s22   ;;  %s676_s21 = sphi %s726_s21, %s884_s21   ;;  %s672_s20 = sphi %s724_s20, %s883_s20  }
   0x7   : > { %s747_s25 = sadd.s32 1, %s684_s23   ;;  %s137_s26 = sadd.s32 1, %s680_s22 }
   0x8   : > { %s134_s27 = ssub.s32 %s684_s23, %s747_s25  ;;  %p147_p0 = scmp.ne.s32.totalorder %s680_s22, %s676_s21 }
   0x9   : > { %p135_p1 = scmp.eq.s32.totalorder %s134_s27, 0  ;;  %p148_p2 = scmp.eq.s32.totalorder %s466_s4, 1 }
   0xa   : > { %p153_p3 = scmp.ne.s32.totalorder %s676_s21, %s672_s20  ;;  %p154_p4 = scmp.eq.s32.totalorder %s467_s24, 1 }
   0xb   : > { %s757_s28 = scalar_select %p135_p1, %s680_s22, %s137_s26  }
   0xc   : > { %p759_p5 = por %p148_p2, %p147_p0  ;;  %p763_p6 = por %p154_p4, %p153_p3 }
   0xd   : > { %p470_p7 = scmp.ge.s32.totalorder %s684_s23, 1  ;;  %p193_p8 = scmp.lt.s32.totalorder %s684_s23, 3 }
   0xf   : > { %p194_p9 = pnand %p470_p7, %p193_p8 }
  0x10   : > { %s769_s6 = sshll.u32 (!%p194_p9), %s466_s4, 4  ;;  %v686_v1 = vmov (!%p194_p9), 0.0|0.0   ;;  %vm687_vm0 = vmmov (!%p194_p9), 0   ;;  %v688_v2 = vmov (!%p194_p9), 0.0   ;;  %v243_v3 = vld [vmem:[%s875_s2] sm:$0x1f] (!%p194_p9)  ;;  %v393_v39 = vlaneseq (!%p194_p9) }
  0x11   : > { %197 = sbr.rel (%p194_p9) target bundleno = 341 (0x155), region = 40  ;;  %545 = vmatprep.subr.bf16.mxu0 (!%p194_p9), %v686_v1  ;;  %p221_p10 = scmp.lt.s32.totalorder (!%p194_p9), %s769_s6, 31  ;;  %542 = vmatprep.mubr.msk.f32.mxu0 (!%p194_p9), %vm687_vm0, %v688_v2  ;;  %v689_v4 = vmov (!%p194_p9), 0   ;;  %v387_v5 = vld [vmem:[#allocation2] sm:$0x1] (!%p194_p9)  ;;  %vm249_vm1 = vcmask (!%p194_p9), 80896  }
  0x12   : > { %620 = vset.pattern.permute.xlu0 (!%p194_p9), %v689_v4  ;;  %621 = vset.pattern.permute.xlu1 (!%p194_p9), %v689_v4  ;;  %v372_v6 = vld [vmem:[%s876_s3] sm:$0x1f] (!%p194_p9)  ;;  %vm788_vm2 = vmpackc.low (!%p194_p9), %vm249_vm1, %vm249_vm1  ;;  %vm379_vm3 = vcmask (!%p194_p9), 1044480   ;;  %v394_v43 = vshrl.u32 (!%p194_p9), %v393_v39, 7  ;;  %s218_s18 = sand.u32 (!%p194_p9), 1, %s676_s21   ;;  %s831_s27 = scalar_lea.hbm (!%p194_p9), %s878_s5, %s769_s6 }
  0x13   : > { %246 = vperm.xlu0 (!%p194_p9), %620, %v243_v3   ;;  %390 = vperm.xlu1 (!%p194_p9), %621, %v387_v5   ;;  %v226_v32 = vld [vmem:[%s874_s1] sm:$0x1f] (!%p194_p9)  ;;  %s219_s19 = scalar_lea.vmem (!%p194_p9), [#allocation3], %s218_s18  ;;  %s400_s7 = scalar_lea.sflag (!%p194_p9), [#allocation4], %s218_s18 }
  0x14   : > { %v395_v46 = vsub.s32 (!%p194_p9), 0, %v394_v43  ;;  %s412_s4 = sshll.u32 (!%p194_p9), %s219_s19, 4  ;;  %s833_s4 = int_to_ptr.vmem [resolvable:$true] %s412_s4 }
  0x15   : > { %s622_s8 = scalar_lea.vmem (!%p194_p9), %s833_s4, 16 }
  0x16   : > { %p623_p11 = scmp.ne.s32.totalorder (!%p194_p9), %s833_s4, %s622_s8 }
  0x17   : > { %375 = vperm.xlu0 (!%p194_p9), %620, %v372_v6  }
  0x18   : > { %s222_s9 = scalar_select %p221_p10, %s769_s6, 31 }
  0x19   : > { %p624_p12 = pnand %p623_p11, %p759_p5 }
  0x1a   : > { %s472_s12 = sshll.u32 %s222_s9, 3  ;;  %s690_s9 = smov [#allocation3]  }
  0x1b   : > { %s782_s15 = scalar_lea.vmem %s873_s0, %s472_s12  ;;  %p625_p13 = pneg %p624_p12 }
  0x1c   : > { %v227_v7 = vld [vmem:[%s782_s15] sm:$0xff]  ;;  %v228_v8 = vld [vmem:[%s782_s15 + $0x8] sm:$0xff]  ;;  %v229_v11 = vld [vmem:[%s782_s15 + $0x10] sm:$0xff]  ;;  %s626_s10 = sshll.u32 %s690_s9, 4  ;;  %s627_s10 = int_to_ptr.vmem [resolvable:$false] %s626_s10 }
  0x1d   : > { %v546_v10 = vpack.c.bf16 %v228_v8, %v227_v7  ;;  %v230_v12 = vld [vmem:[%s782_s15 + $0x18] sm:$0xff]  ;;  %v231_v14 = vld [vmem:[%s782_s15 + $0x20] sm:$0xff]  ;;  %v232_v15 = vld [vmem:[%s782_s15 + $0x28] sm:$0xff]  ;;  %s628_s11 = scalar_lea.vmem %s627_s10, 32  ;;  %p629_p0 = scmp.lt.s32.totalorder %s833_s4, %s627_s10 }
  0x1e   : > { %v550_v13 = vpack.c.bf16 %v230_v12, %v229_v11  ;;  %v554_v16 = vpack.c.bf16 %v232_v15, %v231_v14  ;;  %v233_v17 = vld [vmem:[%s782_s15 + $0x30] sm:$0xff]  ;;  %v234_v18 = vld [vmem:[%s782_s15 + $0x38] sm:$0xff]  ;;  %v235_v20 = vld [vmem:[%s782_s15 + $0x40] sm:$0xff]  ;;  %p630_p1 = scmp.lt.s32.totalorder %s628_s11, %s622_s8 }
  0x1f   : > { %548 = vmatpush3.bf16.xpose.msk.msra.mxu0 %vm788_vm2, %v546_v10  ;;  %v558_v19 = vpack.c.bf16 %v234_v18, %v233_v17  ;;  %v236_v21 = vld [vmem:[%s782_s15 + $0x48] sm:$0xff]  ;;  %v237_v23 = vld [vmem:[%s782_s15 + $0x50] sm:$0xff]  ;;  %v238_v24 = vld [vmem:[%s782_s15 + $0x58] sm:$0xff] }
  0x20   : > { %549 = vmatprep.subr.bf16.mxu0 %v686_v1  ;;  %v562_v22 = vpack.c.bf16 %v236_v21, %v235_v20  ;;  %v566_v25 = vpack.c.bf16 %v238_v24, %v237_v23  ;;  %v239_v26 = vld [vmem:[%s782_s15 + $0x60] sm:$0xff]  ;;  %v240_v27 = vld [vmem:[%s782_s15 + $0x68] sm:$0xff]  ;;  %v241_v29 = vld [vmem:[%s782_s15 + $0x70] sm:$0xff]  ;;  %p631_p2 = por %p630_p1, %p629_p0 }
  0x21   : > { %v570_v28 = vpack.c.bf16 %v240_v27, %v239_v26  ;;  %v242_v30 = vld [vmem:[%s782_s15 + $0x78] sm:$0xff] }
  0x22   : > { %v574_v31 = vpack.c.bf16 %v242_v30, %v241_v29  ;;  %p632_p3 = pnand %p631_p2, %p625_p13 }
  0x27   : > { %552 = vmatpush3.bf16.xpose.msk.msra.mxu0 %vm788_vm2, %v550_v13 }
  0x28   : > { %553 = vmatprep.subr.bf16.mxu0 %v686_v1 }
  0x2f   : > { %556 = vmatpush3.bf16.xpose.msk.msra.mxu0 %vm788_vm2, %v554_v16 }
  0x30   : > { %557 = vmatprep.subr.bf16.mxu0 %v686_v1 }
  0x37   : > { %560 = vmatpush3.bf16.xpose.msk.msra.mxu0 %vm788_vm2, %v558_v19 }
  0x38   : > { %561 = vmatprep.subr.bf16.mxu0 %v686_v1 }
  0x3f   : > { %564 = vmatpush3.bf16.xpose.msk.msra.mxu0 %vm788_vm2, %v562_v22 }
  0x40   : > { %565 = vmatprep.subr.bf16.mxu0 %v686_v1 }
  0x47   : > { %568 = vmatpush3.bf16.xpose.msk.msra.mxu0 %vm788_vm2, %v566_v25 }
  0x48   : > { %569 = vmatprep.subr.bf16.mxu0 %v686_v1 }
  0x4f   : > { %572 = vmatpush3.bf16.xpose.msk.msra.mxu0 %vm788_vm2, %v570_v28 }
  0x50   : > { %573 = vmatprep.subr.bf16.mxu0 %v686_v1 }
  0x57   : > { %576 = vmatpush3.bf16.xpose.msk.msra.mxu0 %vm788_vm2, %v574_v31 }
  0x5e   : > { %543 = vmatmul.mubr.msk.f32.vlgmr.msra.gmra.mrb[0].mxu0 %vm249_vm1, %v226_v32 }
  0x92   : > { %v247_v33 = vpop.permute.xlu0 %246  ;;  %v391_v47 = vpop.permute.xlu1 %390 }
  0x93   : > { %v396_v50 = vrot.slane %v391_v47, %v395_v46 }
  0x96   : > { %v376_v38 = vpop.permute.xlu0 %375 }
 0x131   : > { %v367_v34 = vpop.f32.mrb[0].mxu0 }
 0x132   : > { %v368_v35 = vadd.f32 %v367_v34, %v247_v33  ;;  %v544_v36 = vpop.f32.mrb[1].mxu0 }
 0x134   : > { %v371_v37 = vmax.f32 %v368_v35, 0.0 }
 0x136   : > { %v378_v40 = vmul.f32 %v376_v38, %v371_v37 }
 0x138   : > { %v380_v41 = vsel %vm379_vm3, %v378_v40, 0.0 }
 0x139   : > { %v381_v42 = vrot.slane %v380_v41, 4 }
 0x13b   : > { %v382_v44 = vadd.f32 %v381_v42, %v380_v41 }
 0x13d   : > { %v383_v45 = vrot.slane %v382_v44, 2 }
 0x13f   : > { %v384_v48 = vadd.f32 %v383_v45, %v382_v44 }
 0x141   : > { %v385_v49 = vrot.slane %v384_v48, 1 }
 0x143   : > { %v386_v51 = vadd.f32 %v385_v49, %v384_v48 }
 0x145   : > { %v397_v52 = vadd.f32 %v396_v50, %v386_v51 }
 0x147   : > { %398 = vst [vmem:[%s219_s19] sm:$0x1] %v397_v52 }
 0x148   : > { %635 = shalt.err (!%p632_p3)
}
 0x149   : > { %s636_s6 = scalar_lea.hbm %s831_s27, 16  ;;  %s640_s14 = scalar_lea.hbm %s878_s5, 32 }
 0x14a   : > { %p637_p4 = scmp.ne.s32.totalorder %s831_s27, %s636_s6  ;;  %p641_p9 = scmp.lt.u32.totalorder %s831_s27, %s878_s5 }
 0x14b   : > { %p642_p10 = scmp.lt.u32.totalorder %s640_s14, %s636_s6  ;;  %p644_p12 = scmp.lt.u32.totalorder %s636_s6, %s831_s27 }
 0x14c   : > { %p638_p7 = pnand %p637_p4, %p759_p5 }
 0x14d   : > { %p643_p11 = por %p642_p10, %p641_p9 }
 0x14e   : > { %p639_p8 = pneg %p638_p7 }
 0x14f   : > { %p645_p13 = por %p644_p12, %p643_p11 }
 0x151   : > { %p646_p0 = pnand %p645_p13, %p639_p8 }
 0x153   : > { %649 = shalt.err (!%p646_p0)
}
 0x154   : > { %577 = dma.vmem_to_hbm [thread:$0]  (%p759_p5), %s833_s4, 16, %s831_s27, %s400_s7  }
 0x155 PF: > { %p583_p1 = scmp.ge.s32.totalorder %s684_s23, 2  ;;  %s424_s17 = sand.u32 1, %s672_s20  }
 0x156   : > { %s425_s18 = scalar_lea.sflag [#allocation4], %s424_s17 }
 0x157   : > { %p580_p2 = pnand %p583_p1, %p763_p6 }
 0x159   : > { %667 = dma.done.wait (!%p580_p2), %s425_s18, 16  }
 0x15a   : > { %669 = vsyncadd (!%p580_p2), %s425_s18, 4294967280  ;;  %p17_p3 = scmp.ge.s32.totalorder %s747_s25, 4   ;;  %s883_s20 = smov %s676_s21 }
 0x15b   : > { %s884_s21 = smov %s680_s22  ;;  %s885_s22 = smov %s757_s28 }
 0x15c   : > { %s886_s23 = smov %s747_s25  ;;  %19 = sbr.rel (!%p17_p3) target bundleno = 6 (0x6), region = 75 }
 0x163   :  { %429 = vsyncpa [#allocation4], 1 }
 0x164   :  { %431 = vsyncpa [#allocation4 + $0x1], 1 }

</bundles_post_ra>
